<compile_context>
chip_gen: v7x
topology: tpu7x:2x2x1
jax: 0.10.0
libtpu: 0.0.40
codegen_flags: <defaults>
</compile_context>

<pallas_src>
import math

import jax
import jax.numpy as jnp
from jax import lax
from jax.experimental import pallas as pl
from jax.experimental.pallas import tpu as pltpu

DROPOUT_P = 0.5


def _sdpa_dropout_kernel(q_ref, k_ref, v_ref, mask_ref, o_ref):
    # Blocks: q/k/v/o are (Bt, S, D); mask is (Bt, S, S) holding 0.0 (dropped)
    # or 1/(1-p) (kept, dropout scale already folded in).
    inv_scale = 1.0 / math.sqrt(float(q_ref.shape[-1]))

    # Fold 1/sqrt(D) into q (one VPU pass) and feed the MXU bf16 / f32-acc.
    q = (q_ref[...] * inv_scale).astype(jnp.bfloat16)        # (Bt, S, D)
    k = k_ref[...].astype(jnp.bfloat16)                       # (Bt, S, D)

    # scores[b, i, j] = sum_d q[b, i, d] * k[b, j, d]
    # Contract over D directly -- the MXU consumes the RHS transposed natively,
    # so no XLU transpose of k is needed.
    scores = lax.dot_general(
        q, k,
        dimension_numbers=(((2,), (2,)), ((0,), (0,))),
        preferred_element_type=jnp.float32)                   # (Bt, S, S)

    # Numerically stable softmax along the KV axis.
    m = jnp.max(scores, axis=-1, keepdims=True)
    e = jnp.exp(scores - m)
    inv_sum = pl.reciprocal(jnp.sum(e, axis=-1, keepdims=True), approx=True)

    # Dropout + normalization fused; cast to bf16 only AFTER masking so that
    # dropped entries stay exactly zero.
    probs = (e * mask_ref[...]) * inv_sum                     # (Bt, S, S)

    out = lax.dot_general(
        probs.astype(jnp.bfloat16), v_ref[...].astype(jnp.bfloat16),
        dimension_numbers=(((2,), (1,)), ((0,), (0,))),
        preferred_element_type=jnp.float32)                   # (Bt, S, D)
    o_ref[...] = out.astype(o_ref.dtype)


def sdpa_dropout(q, k, v, *, key=None, dropout_p=DROPOUT_P, training=True,
                 batch_block=8):
    """softmax(q @ k^T / sqrt(D), -1) -> dropout(p) -> @ v  for (B, S, D) inputs."""
    B, S, D = q.shape

    # Precompute the dropout mask (with the 1/(1-p) survivor scale folded in).
    # training=False makes dropout the identity, matching nn.Dropout eval mode.
    if training and dropout_p > 0.0:
        if key is None:
            key = jax.random.PRNGKey(0)
        keep = jax.random.bernoulli(key, 1.0 - dropout_p, (B, S, S))
        mask = keep.astype(jnp.float32) * (1.0 / (1.0 - dropout_p))
    else:
        mask = jnp.ones((B, S, S), dtype=jnp.float32)

    # Pack several batch elements per grid step to amortize the ~0.35 us
    # per-step overhead; for B == 1 this is a single invocation (the whole
    # working set is ~100 KiB, trivially VMEM-resident on all generations).
    bt = min(B, batch_block)
    while B % bt:
        bt -= 1
    grid = (B // bt,)

    qkv_spec = pl.BlockSpec((bt, S, D), lambda b: (b, 0, 0))
    mask_spec = pl.BlockSpec((bt, S, S), lambda b: (b, 0, 0))

    return pl.pallas_call(
        _sdpa_dropout_kernel,
        out_shape=jax.ShapeDtypeStruct((B, S, D), q.dtype),
        grid=grid,
        in_specs=[qkv_spec, qkv_spec, qkv_spec, mask_spec],
        out_specs=qkv_spec,
        compiler_params=pltpu.CompilerParams(
            # Batch elements are fully independent (unique output block per
            # step) -> shard the grid across TensorCores on megacore parts.
            dimension_semantics=("parallel",),
        ),
    )(q, k, v, mask)


if __name__ == "__main__":
    # Same shapes as the PyTorch module: (1, 16, 512)
    B, S, D = 1, 16, 512
    key = jax.random.PRNGKey(0)
    kq, kk, kv, kd = jax.random.split(key, 4)
    q1 = jax.random.normal(kq, (B, S, D), dtype=jnp.float32)
    k1 = jax.random.normal(kk, (B, S, D), dtype=jnp.float32)
    v1 = jax.random.normal(kv, (B, S, D), dtype=jnp.float32)

    out = sdpa_dropout(q1, k1, v1, key=kd)
    jax.block_until_ready(out)

    assert out.shape == (B, S, D)
    assert out.dtype == jnp.float32
    assert bool(jnp.all(jnp.isfinite(out)))
    print("KERNEL_OK")
</pallas_src>

<mosaic_0001>
module attributes {stable_mosaic.version = 11 : i64} {
  func.func @_sdpa_dropout_kernel(%arg0: i32, %arg1: memref<1x16x512xf32, #tpu.memory_space<vmem>>, %arg2: memref<1x16x512xf32, #tpu.memory_space<vmem>>, %arg3: memref<1x16x512xf32, #tpu.memory_space<vmem>>, %arg4: memref<1x16x16xf32, #tpu.memory_space<vmem>>, %arg5: memref<1x16x512xf32, #tpu.memory_space<vmem>>) attributes {dimension_semantics = [#tpu.dimension_semantics<parallel>], iteration_bounds = array<i64: 1>, scalar_prefetch = 0 : i64, scratch_operands = 0 : i64, tpu.core_type = #tpu.core_type<tc>, window_params = [{transform_indices = @transform_0, window_bounds = array<i64: 1, 16, 512>}, {transform_indices = @transform_1, window_bounds = array<i64: 1, 16, 512>}, {transform_indices = @transform_2, window_bounds = array<i64: 1, 16, 512>}, {transform_indices = @transform_3, window_bounds = array<i64: 1, 16, 16>}, {transform_indices = @transform_4, window_bounds = array<i64: 1, 16, 512>}]} {
    %c0 = arith.constant 0 : index
    %c0_0 = arith.constant 0 : index
    %c0_1 = arith.constant 0 : index
    %0 = vector.load %arg1[%c0, %c0_0, %c0_1] : memref<1x16x512xf32, #tpu.memory_space<vmem>>, vector<1x16x512xf32>
    %cst = arith.constant 0.0441941731 : f32
    %1 = vector.broadcast %cst : f32 to vector<1x16x512xf32>
    %2 = arith.mulf %0, %1 : vector<1x16x512xf32>
    %3 = arith.truncf %2 : vector<1x16x512xf32> to vector<1x16x512xbf16>
    %c0_2 = arith.constant 0 : index
    %c0_3 = arith.constant 0 : index
    %c0_4 = arith.constant 0 : index
    %4 = vector.load %arg2[%c0_2, %c0_3, %c0_4] : memref<1x16x512xf32, #tpu.memory_space<vmem>>, vector<1x16x512xf32>
    %5 = arith.truncf %4 : vector<1x16x512xf32> to vector<1x16x512xbf16>
    %cst_5 = arith.constant dense<0.000000e+00> : vector<1x16x16xf32>
    %6 = tpu.matmul %3, %5, %cst_5 {dimension_numbers = #tpu.dot_dimension_numbers<[2], [2], [1], [1], [0, 0, 0, 1, 1, 1], [0], [0]>} : vector<1x16x512xbf16>, vector<1x16x512xbf16>, vector<1x16x16xf32> -> vector<1x16x16xf32>
    %cst_6 = arith.constant dense<0xFF800000> : vector<1x16xf32>
    %7 = vector.multi_reduction <maximumf>, %6, %cst_6 [2] : vector<1x16x16xf32> to vector<1x16xf32>
    %8 = vector.shape_cast %7 : vector<1x16xf32> to vector<1x16x1xf32>
    %9 = vector.broadcast %8 : vector<1x16x1xf32> to vector<1x16x16xf32>
    %10 = arith.subf %6, %9 : vector<1x16x16xf32>
    %11 = math.exp %10 : vector<1x16x16xf32>
    %cst_7 = arith.constant dense<0.000000e+00> : vector<1x16xf32>
    %12 = vector.multi_reduction <add>, %11, %cst_7 [2] : vector<1x16x16xf32> to vector<1x16xf32>
    %13 = vector.shape_cast %12 : vector<1x16xf32> to vector<1x16x1xf32>
    %14 = tpu.reciprocal %13 {approx = true} : vector<1x16x1xf32> -> vector<1x16x1xf32>
    %c0_8 = arith.constant 0 : index
    %c0_9 = arith.constant 0 : index
    %c0_10 = arith.constant 0 : index
    %15 = vector.load %arg4[%c0_8, %c0_9, %c0_10] : memref<1x16x16xf32, #tpu.memory_space<vmem>>, vector<1x16x16xf32>
    %16 = arith.mulf %11, %15 : vector<1x16x16xf32>
    %17 = vector.broadcast %14 : vector<1x16x1xf32> to vector<1x16x16xf32>
    %18 = arith.mulf %16, %17 : vector<1x16x16xf32>
    %19 = arith.truncf %18 : vector<1x16x16xf32> to vector<1x16x16xbf16>
    %c0_11 = arith.constant 0 : index
    %c0_12 = arith.constant 0 : index
    %c0_13 = arith.constant 0 : index
    %20 = vector.load %arg3[%c0_11, %c0_12, %c0_13] : memref<1x16x512xf32, #tpu.memory_space<vmem>>, vector<1x16x512xf32>
    %21 = arith.truncf %20 : vector<1x16x512xf32> to vector<1x16x512xbf16>
    %cst_14 = arith.constant dense<0.000000e+00> : vector<1x16x512xf32>
    %22 = tpu.matmul %19, %21, %cst_14 {dimension_numbers = #tpu.dot_dimension_numbers<[2], [1], [1], [2], [0, 0, 0, 1, 1, 2], [0], [0]>} : vector<1x16x16xbf16>, vector<1x16x512xbf16>, vector<1x16x512xf32> -> vector<1x16x512xf32>
    %c0_15 = arith.constant 0 : index
    %c0_16 = arith.constant 0 : index
    %c0_17 = arith.constant 0 : index
    %23 = vector.load %arg5[%c0_15, %c0_16, %c0_17] : memref<1x16x512xf32, #tpu.memory_space<vmem>>, vector<1x16x512xf32>
    tpu.vector_store %arg5[%c0_15, %c0_16, %c0_17], %22 {strides = array<i32>} : memref<1x16x512xf32, #tpu.memory_space<vmem>>, vector<1x16x512xf32>,
    return
  }
  func.func @transform_0(%arg0: i32) -> (i32, i32, i32) {
    %c0_i32 = arith.constant 0 : i32
    %c0_i32_0 = arith.constant 0 : i32
    %c0_i32_1 = arith.constant 0 : i32
    return %arg0, %c0_i32, %c0_i32_0 : i32, i32, i32
  }
  func.func @transform_1(%arg0: i32) -> (i32, i32, i32) {
    %c0_i32 = arith.constant 0 : i32
    %c0_i32_0 = arith.constant 0 : i32
    %c0_i32_1 = arith.constant 0 : i32
    return %arg0, %c0_i32, %c0_i32_0 : i32, i32, i32
  }
  func.func @transform_2(%arg0: i32) -> (i32, i32, i32) {
    %c0_i32 = arith.constant 0 : i32
    %c0_i32_0 = arith.constant 0 : i32
    %c0_i32_1 = arith.constant 0 : i32
    return %arg0, %c0_i32, %c0_i32_0 : i32, i32, i32
  }
  func.func @transform_3(%arg0: i32) -> (i32, i32, i32) {
    %c0_i32 = arith.constant 0 : i32
    %c0_i32_0 = arith.constant 0 : i32
    %c0_i32_1 = arith.constant 0 : i32
    return %arg0, %c0_i32, %c0_i32_0 : i32, i32, i32
  }
  func.func @transform_4(%arg0: i32) -> (i32, i32, i32) {
    %c0_i32 = arith.constant 0 : i32
    %c0_i32_0 = arith.constant 0 : i32
    %c0_i32_1 = arith.constant 0 : i32
    return %arg0, %c0_i32, %c0_i32_0 : i32, i32, i32
  }
}

</mosaic_0001>

<bundles_post_ra>
// kernel: tpu_custom_call.1
= control target key start
LH: loop header
LB: loop body
LE: loop exit
PB: predicated region body
PF: predicated region fallthrough
CT: control target
= control target key end

     0   :  { %9 = vsyncpa [#allocation3], 0  ;;  %s613_s0 = inlined_call_operand.hbm [shape: f32[1,16,512], index: 0, kind: input, shape index: {}]   ;;  %s614_s1 = inlined_call_operand.hbm [shape: f32[1,16,512], index: 1, kind: input, shape index: {}]   ;;  %s615_s2 = inlined_call_operand.hbm [shape: f32[1,16,512], index: 2, kind: input, shape index: {}]   ;;  %s616_s3 = inlined_call_operand.hbm [shape: f32[1,16,16], index: 3, kind: input, shape index: {}]   ;;  %s617_s4 = inlined_call_operand.hbm [shape: f32[1,16,512], index: 4, kind: output, shape index: {}]  }
   0x1   :  { %10 = vsyncpa [#allocation6], 0 }
   0x2   :  { %11 = vsyncpa [#allocation9], 0 }
   0x3   :  { %12 = vsyncpa [#allocation4], 0  ;;  %s486_s15 = smov [#allocation5]   ;;  %s487_s17 = smov [#allocation2]  }
   0x4   :  { %s30_s16 = sshll.u32 %s486_s15, 4  ;;  %s18_s18 = sshll.u32 %s487_s17, 4  ;;  %s31_s16 = int_to_ptr.vmem [resolvable:$true] %s30_s16  ;;  %s521_s18 = int_to_ptr.vmem [resolvable:$true] %s18_s18 }
   0x5   :  { %s368_s21 = scalar_lea.hbm %s614_s1, 1024 }
   0x6   :  { %p369_p0 = scmp.ne.s32.totalorder %s614_s1, %s368_s21  ;;  %p372_p1 = scmp.lt.u32.totalorder %s368_s21, %s614_s1 }
   0x8   :  { %p374_p2 = pnand %p372_p1, %p369_p0 }
   0xa   :  { %377 = shalt.err (!%p374_p2)
}
   0xb   :  { %s378_s26 = scalar_lea.vmem %s31_s16, 1024  ;;  %p383_p4 = scmp.lt.s32.totalorder %s31_s16, %s31_s16 }
   0xc   :  { %p379_p3 = scmp.ne.s32.totalorder %s31_s16, %s378_s26  ;;  %p384_p5 = scmp.lt.s32.totalorder %s378_s26, %s378_s26 }
   0xe   :  { %p385_p6 = por %p384_p5, %p383_p4 }
  0x10   :  { %p386_p7 = pnand %p385_p6, %p379_p3 }
  0x12   :  { %389 = shalt.err (!%p386_p7)
}
  0x13   :  { %s488_s27 = smov 512   ;;  %s489_s28 = smov 32  }
  0x14   :  { %36 = dma.hbm_to_vmem [thread:$0]  %s614_s1, 1024, %s31_s16, [#allocation6], %s488_s27, %s488_s27, %s489_s28  }
  0x15   :  { %s390_s7 = scalar_lea.hbm %s613_s0, 1024 }
  0x16   :  { %p391_p8 = scmp.ne.s32.totalorder %s613_s0, %s390_s7  ;;  %p394_p9 = scmp.lt.u32.totalorder %s390_s7, %s613_s0 }
  0x18   :  { %p396_p10 = pnand %p394_p9, %p391_p8 }
  0x1a   :  { %399 = shalt.err (!%p396_p10)
}
  0x1b   :  { %s400_s12 = scalar_lea.vmem %s521_s18, 1024  ;;  %p405_p12 = scmp.lt.s32.totalorder %s521_s18, %s521_s18 }
  0x1c   :  { %p401_p11 = scmp.ne.s32.totalorder %s521_s18, %s400_s12  ;;  %p406_p13 = scmp.lt.s32.totalorder %s400_s12, %s400_s12 }
  0x1e   :  { %p407_p0 = por %p406_p13, %p405_p12 }
  0x20   :  { %p408_p1 = pnand %p407_p0, %p401_p11 }
  0x22   :  { %411 = shalt.err (!%p408_p1)
}
  0x23   :  { %24 = dma.hbm_to_vmem [thread:$0]  %s613_s0, 1024, %s521_s18, [#allocation3], %s488_s27, %s488_s27, %s489_s28  }
  0x24   :  { %s490_s14 = smov [#allocation7]   ;;  %s491_s16 = smov [#allocation8]  }
  0x25   :  { %s42_s15 = sshll.u32 %s490_s14, 4  ;;  %s54_s17 = sshll.u32 %s491_s16, 4  ;;  %s43_s15 = int_to_ptr.vmem [resolvable:$true] %s42_s15  ;;  %s558_s17 = int_to_ptr.vmem [resolvable:$true] %s54_s17 }
  0x26   :  { %s412_s21 = scalar_lea.hbm %s615_s2, 1024 }
  0x27   :  { %p413_p2 = scmp.ne.s32.totalorder %s615_s2, %s412_s21  ;;  %p416_p3 = scmp.lt.u32.totalorder %s412_s21, %s615_s2 }
  0x29   :  { %p418_p4 = pnand %p416_p3, %p413_p2 }
  0x2b   :  { %421 = shalt.err (!%p418_p4)
}
  0x2c   :  { %s422_s0 = scalar_lea.vmem %s43_s15, 1024  ;;  %p427_p6 = scmp.lt.s32.totalorder %s43_s15, %s43_s15 }
  0x2d   :  { %p423_p5 = scmp.ne.s32.totalorder %s43_s15, %s422_s0  ;;  %p428_p7 = scmp.lt.s32.totalorder %s422_s0, %s422_s0 }
  0x2f   :  { %p429_p8 = por %p428_p7, %p427_p6 }
  0x31   :  { %p430_p9 = pnand %p429_p8, %p423_p5 }
  0x33   :  { %433 = shalt.err (!%p430_p9)
}
  0x34   :  { %48 = dma.hbm_to_vmem [thread:$0]  %s615_s2, 1024, %s43_s15, [#allocation6], %s488_s27, %s488_s27, %s489_s28  }
  0x35   :  { %s434_s5 = scalar_lea.hbm %s616_s3, 256 }
  0x36   :  { %p435_p10 = scmp.ne.s32.totalorder %s616_s3, %s434_s5  ;;  %p438_p11 = scmp.lt.u32.totalorder %s434_s5, %s616_s3 }
  0x38   :  { %p440_p12 = pnand %p438_p11, %p435_p10 }
  0x3a   :  { %443 = shalt.err (!%p440_p12)
}
  0x3b   :  { %s444_s10 = scalar_lea.vmem %s558_s17, 256  ;;  %p449_p0 = scmp.lt.s32.totalorder %s558_s17, %s558_s17 }
  0x3c   :  { %p445_p13 = scmp.ne.s32.totalorder %s558_s17, %s444_s10  ;;  %p450_p1 = scmp.lt.s32.totalorder %s444_s10, %s444_s10 }
  0x3e   :  { %p451_p2 = por %p450_p1, %p449_p0 }
  0x40   :  { %p452_p3 = pnand %p451_p2, %p445_p13 }
  0x42   :  { %455 = shalt.err (!%p452_p3)
}
  0x43   :  { %s492_s2 = smov 128   ;;  %s493_s11 = smov 8  }
  0x44   :  { %60 = dma.hbm_to_vmem [thread:$0]  %s616_s3, 256, %s558_s17, [#allocation9], %s492_s2, %s492_s2, %s493_s11  }
  0x45   :  { %478 = dma.done.wait [#allocation3], 1024  }
  0x46   :  { %479 = vsyncadd [#allocation3], 4294966272 }
  0x47   :  { %480 = dma.done.wait [#allocation6], 2048  }
  0x48   :  { %481 = vsyncadd [#allocation6], 4294965248 }
  0x49   :  { %482 = dma.done.wait [#allocation9], 256  }
  0x4a   :  { %483 = vsyncadd [#allocation9], 4294967040  ;;  %v95_v0 = vld [vmem:[#allocation5 + $0x8] sm:$0xff]  ;;  %v94_v2 = vld [vmem:[#allocation5] sm:$0xff]  ;;  %vm188_vm0 = vcmask 130048   ;;  %v494_v53 = vmov 0  }
  0x4b   :  { %v99_v1 = vld [vmem:[#allocation5 + $0x28] sm:$0xff]  ;;  %v98_v4 = vld [vmem:[#allocation5 + $0x20] sm:$0xff]  ;;  %v97_v14 = vld [vmem:[#allocation5 + $0x18] sm:$0xff]  ;;  %263 = vmatprep.mubr.bf16.mxu1 %v494_v53  ;;  %s495_s3 = smov [#allocation10]  }
  0x4c   :  { %v103_v3 = vpack.c.bf16 %v99_v1, %v95_v0  ;;  %v75_v5 = vld [vmem:[#allocation2 + $0x8] sm:$0xff]  ;;  %v102_v7 = vpack.c.bf16 %v98_v4, %v94_v2  ;;  %v74_v10 = vld [vmem:[#allocation2] sm:$0xff]  ;;  %v101_v15 = vld [vmem:[#allocation5 + $0x38] sm:$0xff]  ;;  %s330_s13 = sshll.u32 %s495_s3, 4  ;;  %s331_s13 = int_to_ptr.vmem [resolvable:$true] %s330_s13 }
  0x4d   :  { %v79_v6 = vld [vmem:[#allocation2 + $0x28] sm:$0xff]  ;;  %v83_v8 = vmul.f32 0.044194173, %v75_v5  ;;  %v78_v11 = vld [vmem:[#allocation2 + $0x20] sm:$0xff]  ;;  %v82_v12 = vmul.f32 0.044194173, %v74_v10  ;;  %v105_v17 = vpack.c.bf16 %v101_v15, %v97_v14  ;;  %p461_p5 = scmp.lt.s32.totalorder %s331_s13, %s331_s13 }
  0x4e   :  { %v87_v9 = vmul.f32 0.044194173, %v79_v6  ;;  %106 = vmatprep.subr.bf16.mxu0 %v103_v3  ;;  %v86_v13 = vmul.f32 0.044194173, %v78_v11  ;;  %v77_v18 = vld [vmem:[#allocation2 + $0x18] sm:$0xff]  ;;  %v96_v19 = vld [vmem:[#allocation5 + $0x10] sm:$0xff] }
  0x4f   :  { %107 = vmatpush1.bf16.xpose.msra.mxu0 %v102_v7  ;;  %v100_v20 = vld [vmem:[#allocation5 + $0x30] sm:$0xff]  ;;  %v81_v21 = vld [vmem:[#allocation2 + $0x38] sm:$0xff]  ;;  %v85_v22 = vmul.f32 0.044194173, %v77_v18  ;;  %v217_v48 = vld [vmem:[#allocation7 + $0x8] sm:$0xff]  ;;  %s456_s14 = scalar_lea.vmem %s331_s13, 1024 }
  0x50   :  { %v91_v16 = vpack.c.bf16 %v87_v9, %v83_v8  ;;  %147 = vmatprep.subr.bf16.mxu0 %v105_v17  ;;  %v89_v23 = vmul.f32 0.044194173, %v81_v21  ;;  %v90_v24 = vpack.c.bf16 %v86_v13, %v82_v12  ;;  %v104_v25 = vpack.c.bf16 %v100_v20, %v96_v19  ;;  %v76_v27 = vld [vmem:[#allocation2 + $0x10] sm:$0xff]  ;;  %v221_v49 = vld [vmem:[#allocation7 + $0x28] sm:$0xff]  ;;  %v216_v50 = vld [vmem:[#allocation7] sm:$0xff]  ;;  %p457_p4 = scmp.ne.s32.totalorder %s331_s13, %s456_s14  ;;  %p462_p6 = scmp.lt.s32.totalorder %s456_s14, %s456_s14 }
  0x51   :  { %v80_v28 = vld [vmem:[#allocation2 + $0x30] sm:$0xff]  ;;  %v84_v29 = vmul.f32 0.044194173, %v76_v27  ;;  %v225_v51 = vpack.c.bf16 %v221_v49, %v217_v48  ;;  %v220_v52 = vld [vmem:[#allocation7 + $0x20] sm:$0xff]  ;;  %v219_v55 = vld [vmem:[#allocation7 + $0x18] sm:$0xff] }
  0x52   :  { %138 = vmatprep.mubr.bf16.mxu0 %v91_v16  ;;  %v93_v26 = vpack.c.bf16 %v89_v23, %v85_v22  ;;  %v88_v30 = vmul.f32 0.044194173, %v80_v28  ;;  %v224_v54 = vpack.c.bf16 %v220_v52, %v216_v50  ;;  %v223_v56 = vld [vmem:[#allocation7 + $0x38] sm:$0xff]  ;;  %v209_v60 = vld [vmem:[#allocation8] sm:$0xff]  ;;  %v210_v61 = vld [vmem:[#allocation8 + $0x8] sm:$0xff]  ;;  %p463_p7 = por %p462_p6, %p461_p5 }
  0x53   :  { %231 = vmatprep.subr.bf16.mxu1 %v225_v51  ;;  %v227_v57 = vpack.c.bf16 %v223_v56, %v219_v55  ;;  %v218_v1 = vld [vmem:[#allocation7 + $0x10] sm:$0xff] }
  0x54   :  { %v92_v31 = vpack.c.bf16 %v88_v30, %v84_v29  ;;  %232 = vmatpush1.bf16.msra.mxu1 %v224_v54  ;;  %v222_v2 = vld [vmem:[#allocation7 + $0x30] sm:$0xff]  ;;  %p464_p8 = pnand %p463_p7, %p457_p4 }
  0x55   :  { %274 = vmatprep.subr.bf16.mxu1 %v227_v57  ;;  %v226_v6 = vpack.c.bf16 %v222_v2, %v218_v1 }
  0x56   :  { %139 = vmatmul.mubr.bf16.vlgmr.msra.gmra.mrb[0].mxu0 %v90_v24 }
  0x57   :  { %148 = vmatpush1.bf16.xpose.msra.mxu0 %v104_v25  ;;  %179 = vmatprep.mubr.bf16.mxu0 %v93_v26 }
  0x62   :  { %180 = vmatmul.mubr.bf16.vlgmr.msra.gmra.mrb[0].mxu0 %v92_v31 }
 0x135   :  { %v181_v32 = vpop.f32.mrb[0].mxu0 }
 0x136   :  { %v183_v33 = vpop.f32.mrb[1].mxu0  ;;  %v189_v34 = vsel %vm188_vm0, %v181_v32, -inf }
 0x137   :  { %190 = vmax.xlane.f32.xlu0 %v189_v34  ;;  %v184_v35 = vpop.f32.mrb[2].mxu0 }
 0x138   :  { %v186_v36 = vpop.f32.mrb[3].mxu0  ;;  %v192_v37 = vsel %vm188_vm0, %v184_v35, -inf }
 0x13b   :  { %193 = vmax.xlane.f32.xlu0 %v192_v37 }
 0x1c4   :  { %v191_v38 = vpop.xlane.xlu0 %190 }
 0x1c5   :  { %v195_v39 = vsub.f32 %v181_v32, %v191_v38 }
 0x1c7   :  { %v197_v40 = vmul.f32 1.442695, %v195_v39 }
 0x1c8   :  { %v194_v41 = vpop.xlane.xlu0 %193 }
 0x1c9   :  { %360 = vpow2.f32 %v197_v40  ;;  %v196_v42 = vsub.f32 %v184_v35, %v194_v41 }
 0x1cb   :  { %v199_v43 = vmul.f32 1.442695, %v196_v42 }
 0x1cd   :  { %362 = vpow2.f32 %v199_v43 }
 0x1d3   :  { %v361_v44 = vpop.eup %360 }
 0x1d4   :  { %v201_v45 = vsel %vm188_vm0, %v361_v44, 0.0  ;;  %v211_v63 = vmul.f32 %v361_v44, %v209_v60 }
 0x1d5   :  { %202 = vadd.xlane.f32.xlu1 %v201_v45 }
 0x1d7   :  { %v363_v46 = vpop.eup %362 }
 0x1d8   :  { %v204_v47 = vsel %vm188_vm0, %v363_v46, 0.0  ;;  %v212_v0 = vmul.f32 %v363_v46, %v210_v61 }
 0x1d9   :  { %205 = vadd.xlane.f32.xlu1 %v204_v47 }
 0x262   :  { %v203_v58 = vpop.xlane.xlu1 %202 }
 0x263   :  { %364 = vrcp.f32 %v203_v58 }
 0x266   :  { %v206_v59 = vpop.xlane.xlu1 %205 }
 0x267   :  { %366 = vrcp.f32 %v206_v59 }
 0x26d   :  { %v365_v62 = vpop.eup %364 }
 0x26e   :  { %v213_v4 = vmul.f32 %v365_v62, %v211_v63 }
 0x271   :  { %v367_v3 = vpop.eup %366 }
 0x272   :  { %v214_v5 = vmul.f32 %v367_v3, %v212_v0 }
 0x274   :  { %v215_v7 = vpack.c.bf16 %v214_v5, %v213_v4 }
 0x276   :  { %344 = vmatmul.mubr.msk.bf16.vlgmr.msra.gmra.mrb[0].mxu1 %vm188_vm0, %v215_v7 }
 0x277   :  { %275 = vmatpush1.bf16.msra.mxu1 %v226_v6  ;;  %306 = vmatprep.mubr.bf16.mxu1 %v494_v53 }
 0x27e   :  { %345 = vmatmul.mubr.msk.bf16.vlgmr.msra.gmra.mrb[4].mxu1 %vm188_vm0, %v215_v7 }
 0x349   :  { %v265_v8 = vpop.f32.mrb[0].mxu1 }
 0x34a   :  { %317 = vst [vmem:[#allocation10] sm:$0xff] %v265_v8  ;;  %v267_v9 = vpop.f32.mrb[1].mxu1 }
 0x34b   :  { %318 = vst [vmem:[#allocation10 + $0x8] sm:$0xff] %v267_v9  ;;  %v269_v10 = vpop.f32.mrb[2].mxu1 }
 0x34c   :  { %321 = vst [vmem:[#allocation10 + $0x20] sm:$0xff] %v269_v10  ;;  %v271_v11 = vpop.f32.mrb[3].mxu1 }
 0x34d   :  { %322 = vst [vmem:[#allocation10 + $0x28] sm:$0xff] %v271_v11 }
 0x351   :  { %v308_v12 = vpop.f32.mrb[4].mxu1 }
 0x352   :  { %319 = vst [vmem:[#allocation10 + $0x10] sm:$0xff] %v308_v12  ;;  %v310_v13 = vpop.f32.mrb[5].mxu1 }
 0x353   :  { %320 = vst [vmem:[#allocation10 + $0x18] sm:$0xff] %v310_v13  ;;  %v312_v14 = vpop.f32.mrb[6].mxu1 }
 0x354   :  { %323 = vst [vmem:[#allocation10 + $0x30] sm:$0xff] %v312_v14  ;;  %v314_v15 = vpop.f32.mrb[7].mxu1 }
 0x355   :  { %324 = vst [vmem:[#allocation10 + $0x38] sm:$0xff] %v314_v15 }
 0x356   :  { %467 = shalt.err (!%p464_p8)
}
 0x357   :  { %s468_s17 = scalar_lea.hbm %s617_s4, 1024 }
 0x358   :  { %p469_p9 = scmp.ne.s32.totalorder %s617_s4, %s468_s17  ;;  %p472_p10 = scmp.lt.u32.totalorder %s468_s17, %s617_s4 }
 0x35a   :  { %p474_p11 = pnand %p472_p10, %p469_p9 }
 0x35c   :  { %477 = shalt.err (!%p474_p11)
}
 0x35d   :  { %336 = dma.vmem_to_hbm [thread:$0]  %s331_s13, 1024, %s617_s4, [#allocation4], %s488_s27, %s488_s27, %s489_s28  }
 0x35e   :  { %484 = dma.done.wait [#allocation4], 1024  }
 0x35f   :  { %485 = vsyncadd [#allocation4], 4294966272 }
 0x360   :  { %340 = vsyncpa [#allocation3], 1 }
 0x361   :  { %341 = vsyncpa [#allocation6], 1 }
 0x362   :  { %342 = vsyncpa [#allocation9], 1 }
 0x363   :  { %343 = vsyncpa [#allocation4], 1 }

</bundles_post_ra>
